<compile_context>
chip_gen: v6e
topology: v6e:2x2x1
jax: 0.10.0
libtpu: 0.0.40
codegen_flags: <defaults>
</compile_context>

<pallas_src>
import math
import functools

import jax
import jax.numpy as jnp
from jax.experimental import pallas as pl
from jax.experimental.pallas import tpu as pltpu


def _round_up(x: int, m: int) -> int:
    return ((x + m - 1) // m) * m


def _cdiv(a: int, b: int) -> int:
    return (a + b - 1) // b


def _block_byte_cap() -> int:
    """Per-output-block byte budget (double-buffered by the pipeline)."""
    try:
        kind = jax.devices()[0].device_kind.lower()
    except Exception:  # pragma: no cover - defensive; perf-only decision
        kind = ""
    if "v5 lite" in kind or "v5e" in kind or "v5lite" in kind:
        return 2 * 1024 * 1024      # v5e: 16 MiB default scoped VMEM; 2 MiB blocks are overhead-free
    if "v6" in kind:
        return 4 * 1024 * 1024
    if "7" in kind:
        return 8 * 1024 * 1024      # v7x: amortize ~0.35us/step against 3.2 TB/s HBM
    return 4 * 1024 * 1024


def _sinusoidal_kernel_phase(t_ref, f_ref, p_ref, o_ref):
    # Single transcendental per element: cos(x) == sin(x + pi/2).
    # t: (TB, 1); f/p: (1, dim); full-lane-width unmasked store.
    t = t_ref[...]
    o_ref[...] = jnp.sin(t * f_ref[...] + p_ref[...])


def _sinusoidal_kernel_slab(t_ref, f_ref, o_ref, *, half: int):
    # Bit-exact variant: one sin OR cos per element, two lane-aligned stores
    # (half is a multiple of 128 -> both stores are unmasked vst).
    t = t_ref[...]                    # (TB, 1)
    ang = t * f_ref[...]              # (TB, half)
    o_ref[:, :half] = jnp.sin(ang)
    o_ref[:, half:] = jnp.cos(ang)


def sinusoidal_position_embeddings(time: jax.Array, dim: int, block_rows=None) -> jax.Array:
    """time: (B,) float/int timesteps -> (B, dim) float32 embeddings."""
    assert dim % 2 == 0 and dim >= 4, "dim must be even and >= 4 (half-1 > 0)"
    half = dim // 2
    B = time.shape[0]

    # --- batch tiling ------------------------------------------------------
    if block_rows is None:
        block_rows = max(8, (_block_byte_cap() // (dim * 4)) // 8 * 8)
    else:
        block_rows = max(8, (block_rows // 8) * 8)

    nblocks = max(1, _cdiv(B, block_rows))
    if B > 8 and nblocks < 2:
        nblocks = 2                               # give both v7x TensorCores work
    tb = max(8, _round_up(_cdiv(B, nblocks), 8))  # balanced blocks, <8 rows pad each
    b_pad = tb * nblocks

    t2d = time.astype(jnp.float32).reshape(B, 1)
    if b_pad != B:
        t2d = jnp.pad(t2d, ((0, b_pad - B), (0, 0)))

    # --- hoisted frequency (and phase) tables ------------------------------
    scale = math.log(10000.0) / (half - 1)
    freqs = jnp.exp(jnp.arange(half, dtype=jnp.float32) * (-scale))

    compiler_params = pltpu.CompilerParams(dimension_semantics=("parallel",))
    out_shape = jax.ShapeDtypeStruct((b_pad, dim), jnp.float32)
    t_spec = pl.BlockSpec((tb, 1), lambda i: (i, 0))
    out_spec = pl.BlockSpec((tb, dim), lambda i: (i, 0))

    if half % 128 == 0:
        # Bit-exact two-slab path (dim >= 256): both stores lane-aligned.
        out = pl.pallas_call(
            functools.partial(_sinusoidal_kernel_slab, half=half),
            out_shape=out_shape,
            grid=(nblocks,),
            in_specs=[t_spec,
                      pl.BlockSpec((1, half), lambda i: (0, 0))],
            out_specs=out_spec,
            compiler_params=compiler_params,
        )(t2d, freqs.reshape(1, half))
    else:
        # Phase-table path (e.g. dim == 128): one full-lane store, half the VALU work.
        freqs_rep = jnp.concatenate([freqs, freqs]).reshape(1, dim)
        phase = jnp.concatenate([
            jnp.zeros((half,), dtype=jnp.float32),
            jnp.full((half,), math.pi / 2, dtype=jnp.float32),
        ]).reshape(1, dim)
        out = pl.pallas_call(
            _sinusoidal_kernel_phase,
            out_shape=out_shape,
            grid=(nblocks,),
            in_specs=[t_spec,
                      pl.BlockSpec((1, dim), lambda i: (0, 0)),
                      pl.BlockSpec((1, dim), lambda i: (0, 0))],
            out_specs=out_spec,
            compiler_params=compiler_params,
        )(t2d, freqs_rep, phase)

    return out[:B] if b_pad != B else out


def _reference(time, dim):
    half = dim // 2
    scale = math.log(10000.0) / (half - 1)
    freqs = jnp.exp(jnp.arange(half, dtype=jnp.float32) * (-scale))
    ang = time.astype(jnp.float32)[:, None] * freqs[None, :]
    return jnp.concatenate([jnp.sin(ang), jnp.cos(ang)], axis=-1)


if __name__ == "__main__":
    key = jax.random.PRNGKey(0)

    # --- dim=128: phase-table path (sin(x+pi/2) ~= cos(x); tolerance covers
    # the f32 rounding of the angle sum for timesteps up to ~1000). ----------
    B, DIM = 8, 128
    time = jax.random.randint(key, (B,), 0, 1000).astype(jnp.float32)
    out = jax.block_until_ready(sinusoidal_position_embeddings(time, DIM))
    ref = _reference(time, DIM)
    assert out.shape == (B, DIM), out.shape
    assert out.dtype == jnp.float32
    assert jnp.allclose(out, ref, atol=2e-4, rtol=1e-4), float(jnp.max(jnp.abs(out - ref)))

    # --- non-multiple-of-8 batch (padding + slice path). --------------------
    time2 = jax.random.uniform(jax.random.PRNGKey(1), (5,), minval=0.0, maxval=1000.0)
    out2 = jax.block_until_ready(sinusoidal_position_embeddings(time2, DIM))
    assert out2.shape == (5, DIM)
    assert jnp.allclose(out2, _reference(time2, DIM), atol=2e-4, rtol=1e-4)

    # --- dim=256: bit-exact two-slab path, multi-block grid (nblocks=2). ----
    B3, DIM3 = 16, 256
    time3 = jax.random.randint(jax.random.PRNGKey(2), (B3,), 0, 1000).astype(jnp.float32)
    out3 = jax.block_until_ready(sinusoidal_position_embeddings(time3, DIM3))
    ref3 = _reference(time3, DIM3)
    assert out3.shape == (B3, DIM3)
    assert jnp.allclose(out3, ref3, atol=2e-5, rtol=1e-5), float(jnp.max(jnp.abs(out3 - ref3)))

    print("KERNEL_OK")
</pallas_src>

<mosaic_0001>
module attributes {stable_mosaic.version = 11 : i64} {
  func.func @_sinusoidal_kernel_phase(%arg0: i32, %arg1: memref<8x1xf32, #tpu.memory_space<vmem>>, %arg2: memref<1x128xf32, #tpu.memory_space<vmem>>, %arg3: memref<1x128xf32, #tpu.memory_space<vmem>>, %arg4: memref<8x128xf32, #tpu.memory_space<vmem>>) attributes {dimension_semantics = [#tpu.dimension_semantics<parallel>], iteration_bounds = array<i64: 1>, scalar_prefetch = 0 : i64, scratch_operands = 0 : i64, tpu.core_type = #tpu.core_type<tc>, window_params = [{transform_indices = @transform_0, window_bounds = array<i64: 8, 1>}, {pipeline_mode = #tpu.pipeline_mode<synchronous>, transform_indices = @transform_1, window_bounds = array<i64: 1, 128>}, {pipeline_mode = #tpu.pipeline_mode<synchronous>, transform_indices = @transform_2, window_bounds = array<i64: 1, 128>}, {transform_indices = @transform_3, window_bounds = array<i64: 8, 128>}]} {
    %c0 = arith.constant 0 : index
    %c0_0 = arith.constant 0 : index
    %0 = vector.load %arg1[%c0, %c0_0] : memref<8x1xf32, #tpu.memory_space<vmem>>, vector<8x1xf32>
    %c0_1 = arith.constant 0 : index
    %c0_2 = arith.constant 0 : index
    %1 = vector.load %arg2[%c0_1, %c0_2] : memref<1x128xf32, #tpu.memory_space<vmem>>, vector<1x128xf32>
    %2 = vector.broadcast %0 : vector<8x1xf32> to vector<8x128xf32>
    %3 = vector.broadcast %1 : vector<1x128xf32> to vector<8x128xf32>
    %4 = arith.mulf %2, %3 : vector<8x128xf32>
    %c0_3 = arith.constant 0 : index
    %c0_4 = arith.constant 0 : index
    %5 = vector.load %arg3[%c0_3, %c0_4] : memref<1x128xf32, #tpu.memory_space<vmem>>, vector<1x128xf32>
    %6 = vector.broadcast %5 : vector<1x128xf32> to vector<8x128xf32>
    %7 = arith.addf %4, %6 : vector<8x128xf32>
    %8 = math.sin %7 : vector<8x128xf32>
    %c0_5 = arith.constant 0 : index
    %c0_6 = arith.constant 0 : index
    %9 = vector.load %arg4[%c0_5, %c0_6] : memref<8x128xf32, #tpu.memory_space<vmem>>, vector<8x128xf32>
    tpu.vector_store %arg4[%c0_5, %c0_6], %8 {strides = array<i32>} : memref<8x128xf32, #tpu.memory_space<vmem>>, vector<8x128xf32>,
    return
  }
  func.func @transform_0(%arg0: i32) -> (i32, i32) {
    %c0_i32 = arith.constant 0 : i32
    %c0_i32_0 = arith.constant 0 : i32
    return %arg0, %c0_i32 : i32, i32
  }
  func.func @transform_1(%arg0: i32) -> (i32, i32) {
    %c0_i32 = arith.constant 0 : i32
    %c0_i32_0 = arith.constant 0 : i32
    %c0_i32_1 = arith.constant 0 : i32
    return %c0_i32, %c0_i32_0 : i32, i32
  }
  func.func @transform_2(%arg0: i32) -> (i32, i32) {
    %c0_i32 = arith.constant 0 : i32
    %c0_i32_0 = arith.constant 0 : i32
    %c0_i32_1 = arith.constant 0 : i32
    return %c0_i32, %c0_i32_0 : i32, i32
  }
  func.func @transform_3(%arg0: i32) -> (i32, i32) {
    %c0_i32 = arith.constant 0 : i32
    %c0_i32_0 = arith.constant 0 : i32
    return %arg0, %c0_i32 : i32, i32
  }
}

</mosaic_0001>

<bundles_post_ra>
// kernel: tpu_custom_call.1
= control target key start
LH: loop header
LB: loop body
LE: loop exit
PB: predicated region body
PF: predicated region fallthrough
CT: control target
= control target key end

     0   :  { %v201_v1 = vmov 0   ;;  %s262_s0 = inlined_call_operand.vmem [shape: f32[8,1], index: 0, kind: input, shape index: {}]   ;;  %s263_s1 = inlined_call_operand.vmem [shape: f32[1,128], index: 1, kind: input, shape index: {}]   ;;  %s264_s2 = inlined_call_operand.vmem [shape: f32[1,128], index: 2, kind: input, shape index: {}]   ;;  %s265_s3 = inlined_call_operand.hbm [shape: f32[8,128], index: 3, kind: output, shape index: {}]  }
   0x1   :  { %v15_v0 = vld [vmem:[%s262_s0] sm:$0xff]  ;;  %174 = vset.pattern.permute.xlu0 %v201_v1 }
   0x2   :  { %19 = vperm.xlu0 %174, %v15_v0  }
   0x3   :  { %8 = vsyncpa [#allocation3], 0  ;;  %v156_v2 = vld [vmem:[%s263_s1] ss:$0 sm:$0xff]  ;;  %v202_v18 = vmov 2102212464  }
   0x4   :  { %v157_v3 = vld [vmem:[%s264_s2] ss:$0 sm:$0xff]  ;;  %v203_v20 = vmov 920167782   ;;  %v204_v24 = vmov 1326507024  }
   0x5   :  { %v205_v26 = vmov 683565275   ;;  %v206_v28 = vmov 2475754826   ;;  %v207_v31 = vmov 2131351028  }
   0x6   :  { %s208_s0 = smov [#allocation2]  }
   0x7   :  { %s148_s1 = sshll.u32 %s208_s0, 4  ;;  %s149_s1 = int_to_ptr.vmem [resolvable:$true] %s148_s1 }
   0x8   :  { %s179_s2 = scalar_lea.vmem %s149_s1, 128  ;;  %p184_p1 = scmp.lt.s32.totalorder %s149_s1, %s149_s1 }
   0x9   :  { %p180_p0 = scmp.ne.s32.totalorder %s149_s1, %s179_s2  ;;  %p185_p2 = scmp.lt.s32.totalorder %s179_s2, %s179_s2 }
   0xb   :  { %p186_p3 = por %p185_p2, %p184_p1 }
   0xd   :  { %p187_p4 = pnand %p186_p3, %p180_p0 }
  0x7d   :  { %v20_v4 = vpop.permute.xlu0 %19 }
  0x7e   :  { %v28_v5 = vmul.f32 %v156_v2, %v20_v4 }
  0x80   :  { %v238_v6 = vadd.f32 %v157_v3, %v28_v5 }
  0x82   :  { %v40_v7 = vand.u32 2139095040, %v238_v6  ;;  %v37_v8 = vand.u32 2147483647, %v238_v6  ;;  %vm39_vm7 = vcmp.lt.s32.totalorder %v238_v6, 0  ;;  %vm129_vm12 = vweird.f32 %v238_v6 }
  0x84   :  { %v41_v9 = vshrl.u32 %v40_v7, 23  ;;  %v44_v11 = vand.u32 8388607, %v37_v8  ;;  %vm38_vm8 = vcmp.le.f32.partialorder %v37_v8, 0.7853982 }
  0x86   :  { %v158_v10 = vadd.s32 4294967169, %v41_v9  ;;  %v45_v14 = vor.u32 8388608, %v44_v11 }
  0x88   :  { %v47_v12 = vadd.s32 1, %v158_v10  ;;  %v85_v22 = vshll.u32 %v45_v14, 8 }
  0x8a   :  { %vm48_vm0 = vcmp.gt.s32.totalorder %v47_v12, 0 }
  0x8b   :  { %v49_v13 = vsel %vm48_vm0, %v47_v12, 0 }
  0x8c   :  { %v51_v15 = vand.u32 31, %v49_v13  ;;  %v50_v16 = vshrl.u32 %v49_v13, 5 }
  0x8e   :  { %v52_v17 = vsub.s32 32, %v51_v15  ;;  %v63_v19 = vshll.u32 %v202_v18, %v51_v15  ;;  %v66_v21 = vshll.u32 %v203_v20, %v51_v15  ;;  %v54_v27 = vshll.u32 %v205_v26, %v51_v15 }
  0x8f   :  { %v57_v30 = vshll.u32 %v206_v28, %v51_v15  ;;  %v60_v33 = vshll.u32 %v207_v31, %v51_v15  ;;  %vm72_vm1 = vcmp.lt.s32.totalorder %v50_v16, 4  ;;  %vm69_vm2 = vcmp.lt.s32.totalorder %v50_v16, 1 }
  0x90   :  { %v64_v23 = vshrl.u32 %v203_v20, %v52_v17  ;;  %v67_v25 = vshrl.u32 %v204_v24, %v52_v17  ;;  %v55_v29 = vshrl.u32 %v206_v28, %v52_v17  ;;  %v58_v32 = vshrl.u32 %v207_v31, %v52_v17 }
  0x91   :  { %v61_v34 = vshrl.u32 %v202_v18, %v52_v17  ;;  %v53_v38 = vshrl.u32 %v205_v26, %v52_v17  ;;  %vm70_vm3 = vcmp.lt.s32.totalorder %v50_v16, 2  ;;  %vm71_vm4 = vcmp.lt.s32.totalorder %v50_v16, 3 }
  0x92   :  { %v65_v35 = vor.u32 %v64_v23, %v63_v19  ;;  %v68_v36 = vor.u32 %v67_v25, %v66_v21  ;;  %v56_v37 = vor.u32 %v55_v29, %v54_v27  ;;  %v59_v39 = vor.u32 %v58_v32, %v57_v30 }
  0x93   :  { %v62_v40 = vor.u32 %v61_v34, %v60_v33 }
  0x94   :  { %v78_v41 = vsel %vm72_vm1, %v65_v35, 920167782  ;;  %v82_v42 = vsel %vm72_vm1, %v68_v36, 1326507024  ;;  %v77_v44 = vsel %vm69_vm2, %v56_v37, %v59_v39  ;;  %v73_v47 = vsel %vm69_vm2, %v53_v38, %v56_v37 }
  0x95   :  { %v74_v43 = vsel %vm72_vm1, %v62_v40, 2102212464  ;;  %v79_v45 = vsel %vm71_vm4, %v62_v40, %v78_v41  ;;  %v81_v46 = vsel %vm69_vm2, %v59_v39, %v62_v40  ;;  %v83_v50 = vsel %vm71_vm4, %v65_v35, %v82_v42 }
  0x96   :  { %v75_v48 = vsel %vm71_vm4, %v59_v39, %v74_v43  ;;  %v80_v49 = vsel %vm70_vm3, %v77_v44, %v79_v45  ;;  %v84_v51 = vsel %vm70_vm3, %v81_v46, %v83_v50 }
  0x97   :  { %v244_v52 = vmul.u32.u64.low %v85_v22, %v80_v49  ;;  %v245_v53 = vmul.u32.u64.high %v85_v22, %v80_v49, %v244_v52  ;;  %v247_v54 = vmul.u32.u64.low %v85_v22, %v84_v51  ;;  %v248_v55 = vmul.u32.u64.high %v85_v22, %v84_v51, %v247_v54 }
  0x98   :  { %v76_v56 = vsel %vm70_vm3, %v73_v47, %v75_v48 }
  0x99   :  { %v95_v57 = vadd.s32 1, %v245_v53  ;;  %v92_v58 = vmul.u32 %v85_v22, %v76_v56  ;;  %vm94_vm5 = vc.u32 %v248_v55, %v244_v52  ;;  %v93_v7 = vadd.s32 %v244_v52, %v248_v55 }
  0x9b   :  { %v96_v59 = vsel %vm94_vm5, %v95_v57, %v245_v53 }
  0x9c   :  { %v97_v60 = vadd.s32 %v96_v59, %v92_v58 }
  0x9e   :  { %v98_v61 = vadd.s32 536870912, %v97_v60 }
  0xa0   :  { %v99_v62 = vshrl.u32 %v98_v61, 30 }
  0xa2   :  { %v100_v63 = vshll.u32 %v99_v62, 30  ;;  %v123_v21 = vsub.s32 4, %v99_v62 }
  0xa4   :  { %v101_v0 = vsub.s32 %v97_v60, %v100_v63  ;;  %v124_v24 = vsel %vm39_vm7, %v123_v21, %v99_v62 }
  0xa5   :  { %v126_v25 = vsel %vm38_vm8, 0, %v124_v24 }
  0xa6   :  { %v103_v1 = vsub.s32 0, %v101_v0  ;;  %v130_v26 = vadd.s32 3, %v126_v25 }
  0xa8   :  { %v159_v2 = vmin.u32 %v103_v1, %v101_v0  ;;  %v131_v27 = vand.u32 3, %v130_v26 }
  0xaa   :  { %v105_v3 = vclz %v159_v2  ;;  %vm136_vm9 = vcmp.eq.s32.totalorder %v131_v27, 2  ;;  %vm133_vm10 = vcmp.eq.s32.totalorder %v131_v27, 0  ;;  %vm132_vm11 = vcmp.lt.s32.totalorder %v131_v27, 2 }
  0xac   :  { %v160_v4 = vadd.s32 4294967294, %v105_v3 }
  0xae   :  { %vm161_vm6 = vcmp.lt.s32.totalorder %v160_v4, 0 }
  0xaf   :  { %v108_v5 = vsel %vm161_vm6, 0, %v160_v4 }
  0xb0   :  { %v109_v9 = vsub.s32 32, %v108_v5  ;;  %v113_v10 = vsub.s32 4294967266, %v108_v5  ;;  %v110_v11 = vshll.u32 %v101_v0, %v108_v5 }
  0xb2   :  { %v111_v12 = vshrl.u32 %v93_v7, %v109_v9  ;;  %v114_v13 = vadd.s32 127, %v113_v10 }
  0xb4   :  { %v112_v14 = vor.u32 %v111_v12, %v110_v11  ;;  %v115_v15 = vshll.u32 %v114_v13, 23 }
  0xb6   :  { %v116_v16 = vor.u32 4788187, %v115_v15  ;;  %v119_v18 = vcvt.s32.f32 %v112_v14 }
  0xb8   :  { %v117_v17 = vand.u32 2147483647, %v116_v16 }
  0xba   :  { %v120_v19 = vmul.f32 %v119_v18, %v117_v17 }
  0xbc   :  { %v121_v20 = vxor.u32 2147483648, %v120_v19 }
  0xbe   :  { %v122_v22 = vsel %vm39_vm7, %v121_v20, %v120_v19 }
  0xbf   :  { %v125_v23 = vsel %vm38_vm8, %v238_v6, %v122_v22 }
  0xc0   :  { %175 = vcosq.f32 %v125_v23 }
  0xc1   :  { %177 = vsinq.f32 %v125_v23 }
  0xcd   :  { %v176_v28 = vpop.eup %175 }
  0xce   :  { %v178_v29 = vpop.eup %177  ;;  %v137_v30 = vxor.u32 2147483648, %v176_v28 }
  0xcf   :  { %v134_v31 = vxor.u32 2147483648, %v178_v29 }
  0xd0   :  { %v138_v32 = vsel %vm136_vm9, %v137_v30, %v178_v29 }
  0xd1   :  { %v135_v8 = vsel %vm133_vm10, %v176_v28, %v134_v31 }
  0xd2   :  { %v139_v33 = vsel %vm132_vm11, %v135_v8, %v138_v32 }
  0xd3   :  { %v140_v34 = vsel %vm129_vm12, nan, %v139_v33 }
  0xd4   :  { %141 = vst [vmem:[#allocation2] sm:$0xff] %v140_v34 }
  0xd5   :  { %190 = shalt.err (!%p187_p4)
}
  0xd6   :  { %151 = dma.vmem_to_hbm [thread:$0]  %s149_s1, 128, %s265_s3, [#allocation3]  }
  0xd7   :  { %199 = dma.done.wait [#allocation3], 128  }
  0xd8   :  { %200 = vsyncadd [#allocation3], 4294967168 }
  0xd9   :  { %155 = vsyncpa [#allocation3], 1 }

</bundles_post_ra>
